<compile_context>
chip_gen: v7x
topology: tpu7x:2x2x1
jax: 0.10.0
libtpu: 0.0.40
codegen_flags: <defaults>
</compile_context>

<pallas_src>
import jax
import jax.numpy as jnp
from jax.experimental import pallas as pl
from jax.experimental.pallas import tpu as pltpu

_LANE = 128            # vreg lane width (last dim)
_SUBLANE_32BIT = 8     # vreg sublane height for 32-bit dtypes

# Per-block byte budget (per buffer).  With double buffering and an input +
# output block live at once this is ~4x in flight (~16 MiB), under the
# smallest scoped-VMEM budget across generations (v7x: 32 MiB / 64 MiB).
_DEFAULT_MAX_BLOCK_BYTES = 4 * 1024 * 1024
_VMEM_LIMIT_BYTES = 32 * 1024 * 1024


def _forward_kernel(obs_ref, out_ref):
    # Pure pass-through of the observation tile: locally, the remote server's
    # reply is represented by the observation-conditioned identity.
    out_ref[...] = obs_ref[...]


def _round_up(x, m):
    return (x + m - 1) // m * m


def _min_sublane(dtype):
    """Second-minor alignment for a dtype (sub-32-bit dtypes pack sublanes)."""
    itemsize = jnp.dtype(dtype).itemsize
    return _SUBLANE_32BIT * max(1, 4 // max(1, itemsize))


def model_remote_forward(observation: jax.Array,
                         *,
                         max_block_bytes: int = _DEFAULT_MAX_BLOCK_BYTES) -> jax.Array:
    """Pallas implementation of ModelRemote.forward(observation)."""
    # TODO(synk): the tcp:// ModelServer request/reply round trip (zmq RPC) has
    #             no Pallas equivalent and is not emulated here.
    orig_shape = observation.shape
    if observation.ndim == 0:
        x2 = observation.reshape(1, 1)
    elif observation.ndim == 1:
        x2 = observation[None, :]
    elif observation.ndim == 2:
        x2 = observation
    else:
        x2 = observation.reshape(-1, orig_shape[-1])

    B, D = x2.shape
    itemsize = jnp.dtype(x2.dtype).itemsize
    sub = _min_sublane(x2.dtype)
    row_bytes = max(1, D * itemsize)

    def _row_tile(n_rows):
        # Largest sublane-aligned row tile fitting the per-buffer budget that
        # evenly divides n_rows (so every grid step writes a full tile).
        tb = max(sub, (max_block_bytes // row_bytes) // sub * sub)
        tb = min(tb, n_rows)
        while n_rows % tb != 0:
            tb -= sub
        return tb

    pad_rows = 0
    if B % sub == 0:
        # Zero-pad fast path: last-dim block equals the full array dim (legal
        # even when D is not a multiple of 128); rows are sublane-aligned tiles.
        x = x2
        b_total = B
        tb = _row_tile(B)
    elif B * row_bytes <= max_block_bytes:
        # Ragged row count but small: one full-array block (always legal),
        # no padding, alias preserved.
        x = x2
        b_total = B
        tb = B
    else:
        # Ragged row count AND too large for one block: pad rows only (last
        # resort -- padding costs an extra HBM pass), then row-tile.
        b_total = _round_up(B, sub)
        pad_rows = b_total - B
        x = jnp.pad(x2, ((0, pad_rows), (0, 0)))
        tb = _row_tile(b_total)

    out = pl.pallas_call(
        _forward_kernel,
        out_shape=jax.ShapeDtypeStruct((b_total, D), x.dtype),
        grid_spec=pl.GridSpec(
            grid=(b_total // tb,),
            in_specs=[pl.BlockSpec((tb, D), lambda i: (i, 0))],
            out_specs=pl.BlockSpec((tb, D), lambda i: (i, 0)),
        ),
        # Zero-copy pass-through: reuse the observation buffer for the output,
        # so no extra HBM output allocation is introduced.
        input_output_aliases={0: 0},
        compiler_params=pltpu.CompilerParams(
            # Independent batch tiles: shards across the 2 TensorCores on v7x;
            # harmless on single-TC v5e/v6e.
            dimension_semantics=("parallel",),
            vmem_limit_bytes=_VMEM_LIMIT_BYTES,
        ),
    )(x)

    if pad_rows:
        out = out[:B]
    return out.reshape(orig_shape)


if __name__ == "__main__":
    key = jax.random.PRNGKey(0)
    k0, k1, k2, k3, k4, k5 = jax.random.split(key, 6)

    # (a) tile-aligned f32 observation (batch=8, obs_dim=128): row-tile path.
    obs_a = jax.random.normal(k0, (8, 128), dtype=jnp.float32)
    out_a = jax.block_until_ready(model_remote_forward(obs_a))
    assert out_a.shape == obs_a.shape and out_a.dtype == obs_a.dtype
    assert bool(jnp.allclose(out_a, obs_a)), "pass-through mismatch (aligned)"

    # (b) ragged rows & lanes (10, 200): single full-array block, zero padding.
    obs_b = jax.random.normal(k1, (10, 200), dtype=jnp.float32)
    out_b = jax.block_until_ready(model_remote_forward(obs_b))
    assert out_b.shape == obs_b.shape and out_b.dtype == obs_b.dtype
    assert bool(jnp.allclose(out_b, obs_b)), "pass-through mismatch (ragged)"

    # (c) tiny block budget (64, 128): multi-step, core-parallel grid path.
    obs_c = jax.random.normal(k2, (64, 128), dtype=jnp.float32)
    out_c = jax.block_until_ready(
        model_remote_forward(obs_c, max_block_bytes=16 * 128 * 4))
    assert out_c.shape == obs_c.shape and out_c.dtype == obs_c.dtype
    assert bool(jnp.allclose(out_c, obs_c)), "pass-through mismatch (tiled)"

    # (d) bf16 observation (32, 256): exercises dtype-aware sublane (16) tiling.
    obs_d = jax.random.normal(k3, (32, 256), dtype=jnp.float32).astype(jnp.bfloat16)
    out_d = jax.block_until_ready(model_remote_forward(obs_d))
    assert out_d.shape == obs_d.shape and out_d.dtype == obs_d.dtype
    assert bool(jnp.all(out_d == obs_d)), "pass-through mismatch (bf16)"

    # (e) 1-D observation (200,): flattened to (1, 200), full-block path.
    obs_e = jax.random.normal(k4, (200,), dtype=jnp.float32)
    out_e = jax.block_until_ready(model_remote_forward(obs_e))
    assert out_e.shape == obs_e.shape and out_e.dtype == obs_e.dtype
    assert bool(jnp.allclose(out_e, obs_e)), "pass-through mismatch (1-D)"

    # (f) ragged rows with a deliberately tiny budget (10, 200): forces the
    #     row-pad last-resort path (pads 10 -> 16 rows, tiles by 8).
    obs_f = jax.random.normal(k5, (10, 200), dtype=jnp.float32)
    out_f = jax.block_until_ready(
        model_remote_forward(obs_f, max_block_bytes=2 * 200 * 4))
    assert out_f.shape == obs_f.shape and out_f.dtype == obs_f.dtype
    assert bool(jnp.allclose(out_f, obs_f)), "pass-through mismatch (row-pad)"

    print("KERNEL_OK")
</pallas_src>

<mosaic_0001>
module attributes {stable_mosaic.version = 11 : i64} {
  func.func @_forward_kernel(%arg0: i32, %arg1: memref<8x128xf32, #tpu.memory_space<vmem>>, %arg2: memref<8x128xf32, #tpu.memory_space<vmem>>) attributes {dimension_semantics = [#tpu.dimension_semantics<parallel>], iteration_bounds = array<i64: 1>, scalar_prefetch = 0 : i64, scratch_operands = 0 : i64, tpu.core_type = #tpu.core_type<tc>, window_params = [{transform_indices = @transform_0, window_bounds = array<i64: 8, 128>}, {transform_indices = @transform_1, window_bounds = array<i64: 8, 128>}]} {
    %c0 = arith.constant 0 : index
    %c0_0 = arith.constant 0 : index
    %0 = vector.load %arg1[%c0, %c0_0] : memref<8x128xf32, #tpu.memory_space<vmem>>, vector<8x128xf32>
    %c0_1 = arith.constant 0 : index
    %c0_2 = arith.constant 0 : index
    %1 = vector.load %arg2[%c0_1, %c0_2] : memref<8x128xf32, #tpu.memory_space<vmem>>, vector<8x128xf32>
    tpu.vector_store %arg2[%c0_1, %c0_2], %0 {strides = array<i32>} : memref<8x128xf32, #tpu.memory_space<vmem>>, vector<8x128xf32>,
    return
  }
  func.func @transform_0(%arg0: i32) -> (i32, i32) {
    %c0_i32 = arith.constant 0 : i32
    %c0_i32_0 = arith.constant 0 : i32
    return %arg0, %c0_i32 : i32, i32
  }
  func.func @transform_1(%arg0: i32) -> (i32, i32) {
    %c0_i32 = arith.constant 0 : i32
    %c0_i32_0 = arith.constant 0 : i32
    return %arg0, %c0_i32 : i32, i32
  }
}

</mosaic_0001>

<bundles_post_ra>
// kernel: tpu_custom_call.1
= control target key start
LH: loop header
LB: loop body
LE: loop exit
PB: predicated region body
PF: predicated region fallthrough
CT: control target
= control target key end

     0   :  { %6 = vsyncpa [#allocation3], 0  ;;  %s124_s0 = inlined_call_operand.hbm [shape: f32[8,128], index: 0, kind: input, shape index: {}, may-alias: {0,1}]   ;;  %s125_s1 = inlined_call_operand.hbm [shape: f32[8,128], index: 1, kind: output, shape index: {}, may-alias: {0,1}]  }
   0x1   :  { %7 = vsyncpa [#allocation4], 0  ;;  %s88_s6 = smov [#allocation2]   ;;  %s40_s10 = scalar_lea.hbm %s124_s0, 128 }
   0x2   :  { %s14_s7 = sshll.u32 %s88_s6, 4  ;;  %p41_p0 = scmp.ne.s32.totalorder %s124_s0, %s40_s10  ;;  %s15_s7 = int_to_ptr.vmem [resolvable:$true] %s14_s7 }
   0x3   :  { %p44_p1 = scmp.lt.u32.totalorder %s40_s10, %s124_s0 }
   0x5   :  { %p46_p2 = pnand %p44_p1, %p41_p0 }
   0x7   :  { %49 = shalt.err (!%p46_p2)
}
   0x8   :  { %s50_s15 = scalar_lea.vmem %s15_s7, 128  ;;  %p55_p4 = scmp.lt.s32.totalorder %s15_s7, %s15_s7 }
   0x9   :  { %p51_p3 = scmp.ne.s32.totalorder %s15_s7, %s50_s15  ;;  %p56_p5 = scmp.lt.s32.totalorder %s50_s15, %s50_s15 }
   0xb   :  { %p57_p6 = por %p56_p5, %p55_p4 }
   0xd   :  { %p58_p7 = pnand %p57_p6, %p51_p3 }
   0xf   :  { %61 = shalt.err (!%p58_p7)
}
  0x10   :  { %17 = dma.hbm_to_vmem [thread:$0]  %s124_s0, 128, %s15_s7, [#allocation3]  }
  0x11   :  { %84 = dma.done.wait [#allocation3], 128  }
  0x12   :  { %85 = vsyncadd [#allocation3], 4294967168  ;;  %s89_s18 = smov [#allocation5]   ;;  %v21_v0 = vld [vmem:[#allocation2] sm:$0xff] }
  0x13   :  { %s29_s19 = sshll.u32 %s89_s18, 4  ;;  %22 = vst [vmem:[#allocation5] sm:$0xff] %v21_v0  ;;  %s30_s19 = int_to_ptr.vmem [resolvable:$true] %s29_s19 }
  0x14   :  { %s62_s20 = scalar_lea.vmem %s30_s19, 128  ;;  %p67_p9 = scmp.lt.s32.totalorder %s30_s19, %s30_s19 }
  0x15   :  { %p63_p8 = scmp.ne.s32.totalorder %s30_s19, %s62_s20  ;;  %p68_p10 = scmp.lt.s32.totalorder %s62_s20, %s62_s20 }
  0x17   :  { %p69_p11 = por %p68_p10, %p67_p9 }
  0x19   :  { %p70_p12 = pnand %p69_p11, %p63_p8 }
  0x1b   :  { %73 = shalt.err (!%p70_p12)
}
  0x1c   :  { %s74_s23 = scalar_lea.hbm %s125_s1, 128 }
  0x1d   :  { %p75_p13 = scmp.ne.s32.totalorder %s125_s1, %s74_s23  ;;  %p78_p0 = scmp.lt.u32.totalorder %s74_s23, %s125_s1 }
  0x1f   :  { %p80_p1 = pnand %p78_p0, %p75_p13 }
  0x21   :  { %83 = shalt.err (!%p80_p1)
}
  0x22   :  { %32 = dma.vmem_to_hbm [thread:$0]  %s30_s19, 128, %s125_s1, [#allocation4]  }
  0x23   :  { %86 = dma.done.wait [#allocation4], 128  }
  0x24   :  { %87 = vsyncadd [#allocation4], 4294967168 }
  0x25   :  { %36 = vsyncpa [#allocation3], 1 }
  0x26   :  { %37 = vsyncpa [#allocation4], 1 }

</bundles_post_ra>
